<compile_context>
chip_gen: v6e
topology: v6e:2x2x1
jax: 0.10.0
libtpu: 0.0.40
codegen_flags: <defaults>
</compile_context>

<pallas_src>
import numpy as np
import jax
import jax.numpy as jnp
from jax.experimental import pallas as pl
from jax.experimental.pallas import tpu as pltpu


def _round_up(x, m):
    return ((x + m - 1) // m) * m


def _cdiv(a, b):
    return -(-a // b)


# ----------------------------------------------------------------------------
# Kernel: per (example-tile i, decision-tile j)
#   logits = x_tile @ W^T_tile                       (MXU, bf16 in / f32 acc)
#   code   = rebuilt in-kernel from compact path arrays (VPU iota+select)
#   ls     = mask * softplus(-code * logits)         (EUP exp/log1p)
#   out    = (8, 128) lane-dense partial sum
# ----------------------------------------------------------------------------
def hsm_forward_kernel(x_ref, wt_ref, nodes_ref, cvals_ref, out_ref):
    tile_ex = x_ref.shape[0]
    tile_nd = wt_ref.shape[1]
    max_len = nodes_ref.shape[1]

    # MXU matmul, f32 accumulation.
    logits = jnp.dot(x_ref[...], wt_ref[...],
                     preferred_element_type=jnp.float32)          # (TE, TND)

    # Rebuild the signed path-code block c[e, d] in {-1, 0, +1} for the
    # decision columns covered by this tile. Invalid path slots carry
    # node id -1 / code 0, so they never contribute.
    d_base = pl.program_id(1) * tile_nd
    col = jax.lax.broadcasted_iota(jnp.int32, (tile_ex, tile_nd), 1) + d_base
    nodes = nodes_ref[...]                                        # (TE, L) int32
    cvals = cvals_ref[...]                                        # (TE, L) f32
    code = jnp.zeros((tile_ex, tile_nd), jnp.float32)
    for l in range(max_len):                                      # small, static
        node_l = nodes[:, l:l + 1]                                # (TE, 1)
        c_l = cvals[:, l:l + 1]                                   # (TE, 1)
        code = code + jnp.where(col == node_l, c_l, 0.0)

    # stable masked softplus(-wxy), wxy = code * logit
    z = -code * logits
    sp = jnp.maximum(z, 0.0) + jnp.log1p(jnp.exp(-jnp.abs(z)))
    ls = jnp.where(code != 0.0, sp, 0.0)

    # Reduce example rows into sublane groups of 8 (VPU adds) ...
    ls8 = jnp.sum(ls.reshape(tile_ex // 8, 8, tile_nd), axis=0)   # (8, TND)
    # ... then fold decision columns into one 128-lane slab (static slices).
    acc = ls8[:, 0:128]
    for k in range(1, tile_nd // 128):
        acc = acc + ls8[:, k * 128:(k + 1) * 128]
    out_ref[...] = acc


# ----------------------------------------------------------------------------
# Tile selection with an explicit VMEM budget (fits v7x's 64 MiB physical).
# ----------------------------------------------------------------------------
def _choose_tiles(n_ex, ni_pad, nd_pad, max_len, *,
                  target_ex=256, target_nd=2048,
                  vmem_budget=40 * 1024 * 1024):
    # Example tile: multiple of 16 (bf16 sublane packing), balanced so the
    # trailing tile is not nearly empty.
    n_ex16 = _round_up(max(n_ex, 16), 16)
    num_ex_tiles = max(1, _cdiv(n_ex16, target_ex))
    tile_ex = _round_up(_cdiv(n_ex16, num_ex_tiles), 16)

    def vmem_bytes(t_nd):
        wt = 2 * ni_pad * t_nd * 2                 # bf16 W^T, double-buffered
        xx = 2 * tile_ex * ni_pad * 2              # bf16 x, double-buffered
        meta = 2 * tile_ex * max(max_len, 1) * 8   # nodes(i32) + cvals(f32)
        inter = 4 * tile_ex * t_nd * 4             # f32 logits/code/z/ls (conservative)
        return wt + xx + meta + inter + 2 * 8 * 128 * 4

    tile_nd = min(nd_pad, target_nd)
    while tile_nd > 128 and vmem_bytes(tile_nd) > vmem_budget:
        tile_nd = max(128, (tile_nd // 2) // 128 * 128)
    return tile_ex, num_ex_tiles, tile_nd


# ----------------------------------------------------------------------------
# Wrapper: build compact per-example path arrays (glue) + pallas_call.
# ----------------------------------------------------------------------------
def hsm_forward(x, W, t, paths, codes, begins, lens, *,
                tile_ex=256, tile_nd=2048):
    n_ex, n_in = x.shape
    n_decisions = W.shape[0]
    # max_len is a static property of the (host-side) tree buffers.
    max_len = int(np.max(np.asarray(lens)))

    ni_pad = _round_up(max(n_in, 128), 128)
    nd_pad0 = _round_up(max(n_decisions, 128), 128)

    t_ex, num_ex_tiles, t_nd = _choose_tiles(
        n_ex, ni_pad, nd_pad0, max_len, target_ex=tile_ex, target_nd=tile_nd)
    nd_pad = _round_up(nd_pad0, t_nd)
    num_nd_tiles = nd_pad // t_nd
    n_ex_pad = t_ex * num_ex_tiles

    # --- glue: compact per-example path (node ids + signed codes) -----------
    l_ids = jnp.arange(max_len, dtype=jnp.int32)
    pos = begins[t][:, None] + l_ids[None, :]                     # (n_ex, L)
    valid = l_ids[None, :] < lens[t][:, None]
    pos = jnp.where(valid, pos, 0)
    nodes = jnp.where(valid, paths[pos].astype(jnp.int32), -1)    # (n_ex, L)
    cvals = jnp.where(valid, codes[pos].astype(jnp.float32), 0.0)
    nodes = jnp.pad(nodes, ((0, n_ex_pad - n_ex), (0, 0)), constant_values=-1)
    cvals = jnp.pad(cvals, ((0, n_ex_pad - n_ex), (0, 0)))

    # bf16 MXU inputs, cast before padding (padding contributes 0 everywhere).
    x_pad = jnp.pad(x.astype(jnp.bfloat16),
                    ((0, n_ex_pad - n_ex), (0, ni_pad - n_in)))
    wt_pad = jnp.pad(W.astype(jnp.bfloat16).T,
                     ((0, ni_pad - n_in), (0, nd_pad - n_decisions)))

    partials = pl.pallas_call(
        hsm_forward_kernel,
        out_shape=jax.ShapeDtypeStruct((num_ex_tiles * 8, num_nd_tiles * 128),
                                       jnp.float32),
        grid_spec=pltpu.PrefetchScalarGridSpec(
            num_scalar_prefetch=0,
            # j (decision tiles) innermost: the x / path tiles keep the same
            # block index across inner steps, so they are not re-fetched.
            grid=(num_ex_tiles, num_nd_tiles),
            in_specs=[
                pl.BlockSpec((t_ex, ni_pad), lambda i, j: (i, 0)),    # x
                pl.BlockSpec((ni_pad, t_nd), lambda i, j: (0, j)),    # W^T
                pl.BlockSpec((t_ex, max_len), lambda i, j: (i, 0)),   # path ids
                pl.BlockSpec((t_ex, max_len), lambda i, j: (i, 0)),   # path codes
            ],
            out_specs=pl.BlockSpec((8, 128), lambda i, j: (i, j)),
        ),
        compiler_params=pltpu.CompilerParams(
            dimension_semantics=("parallel", "parallel"),
            # Above the v5e (16 MiB) / v6e (32 MiB) default scoped limits,
            # below v7x's 64 MiB physical VMEM; tiles are budgeted to ~40 MiB.
            vmem_limit_bytes=48 * 1024 * 1024),
    )(x_pad, wt_pad, nodes, cvals)

    # final scalar reduction (padded rows/lanes are exactly zero)
    return jnp.sum(partials)


# ----------------------------------------------------------------------------
# Synthetic huffman tree (replaces TreeParser.parse(huff_tree)).
#
#   node 0:  left -> node 1,  right -> word 3
#   node 1:  left -> node 2,  right -> word 2
#   node 2:  left -> word 0,  right -> word 1
# ----------------------------------------------------------------------------
def build_tree():
    paths_a = [np.array([0, 1, 2], np.int32),   # word 0
               np.array([0, 1, 2], np.int32),   # word 1
               np.array([0, 1], np.int32),      # word 2
               np.array([0], np.int32)]         # word 3
    codes_a = [np.array([1.0, 1.0, 1.0], np.float32),
               np.array([1.0, 1.0, -1.0], np.float32),
               np.array([1.0, -1.0], np.float32),
               np.array([-1.0], np.float32)]
    lens_a = np.array([len(p) for p in paths_a], np.int32)
    paths = np.concatenate(paths_a)
    codes = np.concatenate(codes_a)
    begins = np.concatenate([[0], np.cumsum(lens_a)]).astype(np.int32)
    n_decisions = int(paths.max()) + 1
    return paths, codes, begins, lens_a, n_decisions


def reference_loss(x, W, t, paths, codes, begins, lens):
    x, W = np.asarray(x), np.asarray(W)
    t = np.asarray(t)
    total = 0.0
    for i in range(x.shape[0]):
        b, l = int(begins[t[i]]), int(lens[t[i]])
        for j in range(l):
            node = int(paths[b + j])
            wxy = float(np.dot(W[node], x[i])) * float(codes[b + j])
            z = -wxy
            total += max(z, 0.0) + np.log1p(np.exp(-abs(z)))
    return np.float32(total)


if __name__ == "__main__":
    n_ex, n_in = 16, 32
    paths_np, codes_np, begins_np, lens_np, n_decisions = build_tree()
    n_vocab = len(lens_np)

    key = jax.random.PRNGKey(0)
    kx, kw, kt = jax.random.split(key, 3)
    x = jax.random.normal(kx, (n_ex, n_in), dtype=jnp.float32)
    # deterministic init of W (module uses orthogonal init; synthetic here)
    W = jax.random.normal(kw, (n_decisions, n_in), dtype=jnp.float32) * 0.1
    t = jax.random.randint(kt, (n_ex,), 0, n_vocab, dtype=jnp.int32)

    paths = jnp.asarray(paths_np)
    codes = jnp.asarray(codes_np)
    begins = jnp.asarray(begins_np)
    lens = jnp.asarray(lens_np)

    loss = hsm_forward(x, W, t, paths, codes, begins, lens)
    loss = jax.block_until_ready(loss)

    # Reference uses the same bf16-rounded inputs the kernel feeds the MXU
    # (accumulation itself is f32), so tolerances stay tight.
    x_q = np.asarray(x.astype(jnp.bfloat16).astype(jnp.float32))
    W_q = np.asarray(W.astype(jnp.bfloat16).astype(jnp.float32))
    ref = reference_loss(x_q, W_q, t, paths_np, codes_np, begins_np, lens_np)
    np.testing.assert_allclose(np.asarray(loss), ref, rtol=1e-4, atol=1e-4)
    print("KERNEL_OK")
</pallas_src>

<mosaic_0001>
module attributes {stable_mosaic.version = 11 : i64} {
  func.func @hsm_forward_kernel(%arg0: i32, %arg1: i32, %arg2: memref<16x128xbf16, #tpu.memory_space<vmem>>, %arg3: memref<128x128xbf16, #tpu.memory_space<vmem>>, %arg4: memref<16x3xi32, #tpu.memory_space<vmem>>, %arg5: memref<16x3xf32, #tpu.memory_space<vmem>>, %arg6: memref<8x128xf32, #tpu.memory_space<vmem>>) attributes {dimension_semantics = [#tpu.dimension_semantics<parallel>, #tpu.dimension_semantics<parallel>], iteration_bounds = array<i64: 1, 1>, scalar_prefetch = 0 : i64, scratch_operands = 0 : i64, tpu.core_type = #tpu.core_type<tc>, window_params = [{transform_indices = @transform_0, window_bounds = array<i64: 16, 128>}, {transform_indices = @transform_1, window_bounds = array<i64: 128, 128>}, {transform_indices = @transform_2, window_bounds = array<i64: 16, 3>}, {transform_indices = @transform_3, window_bounds = array<i64: 16, 3>}, {transform_indices = @transform_4, window_bounds = array<i64: 8, 128>}]} {
    %c0 = arith.constant 0 : index
    %c0_0 = arith.constant 0 : index
    %0 = vector.load %arg2[%c0, %c0_0] : memref<16x128xbf16, #tpu.memory_space<vmem>>, vector<16x128xbf16>
    %c0_1 = arith.constant 0 : index
    %c0_2 = arith.constant 0 : index
    %1 = vector.load %arg3[%c0_1, %c0_2] : memref<128x128xbf16, #tpu.memory_space<vmem>>, vector<128x128xbf16>
    %cst = arith.constant dense<0.000000e+00> : vector<16x128xf32>
    %2 = tpu.matmul %0, %1, %cst {dimension_numbers = #tpu.dot_dimension_numbers<[1], [0], [0], [1], [0, 0, 1, 1], [], []>} : vector<16x128xbf16>, vector<128x128xbf16>, vector<16x128xf32> -> vector<16x128xf32>
    %c128_i32 = arith.constant 128 : i32
    %3 = arith.muli %arg1, %c128_i32 : i32
    %4 = tpu.iota {dimensions = array<i32: 1>} : vector<16x128xi32>
    %5 = vector.broadcast %3 : i32 to vector<16x128xi32>
    %6 = arith.addi %4, %5 : vector<16x128xi32>
    %c0_3 = arith.constant 0 : index
    %c0_4 = arith.constant 0 : index
    %7 = vector.load %arg4[%c0_3, %c0_4] : memref<16x3xi32, #tpu.memory_space<vmem>>, vector<16x3xi32>
    %c0_5 = arith.constant 0 : index
    %c0_6 = arith.constant 0 : index
    %8 = vector.load %arg5[%c0_5, %c0_6] : memref<16x3xf32, #tpu.memory_space<vmem>>, vector<16x3xf32>
    %cst_7 = arith.constant 0.000000e+00 : f32
    %9 = vector.broadcast %cst_7 : f32 to vector<16x128xf32>
    %10 = vector.extract_strided_slice %7 {offsets = [0, 0], sizes = [16, 1], strides = [1, 1]} : vector<16x3xi32> to vector<16x1xi32>
    %11 = vector.extract_strided_slice %8 {offsets = [0, 0], sizes = [16, 1], strides = [1, 1]} : vector<16x3xf32> to vector<16x1xf32>
    %12 = vector.broadcast %10 : vector<16x1xi32> to vector<16x128xi32>
    %13 = arith.cmpi eq, %6, %12 : vector<16x128xi32>
    %cst_8 = arith.constant 0.000000e+00 : f32
    %14 = vector.shape_cast %11 : vector<16x1xf32> to vector<16x1xf32>
    %15 = vector.broadcast %14 : vector<16x1xf32> to vector<16x128xf32>
    %16 = vector.broadcast %cst_8 : f32 to vector<16x128xf32>
    %17 = arith.select %13, %15, %16 : vector<16x128xi1>, vector<16x128xf32>
    %18 = arith.addf %9, %17 : vector<16x128xf32>
    %19 = vector.extract_strided_slice %7 {offsets = [0, 1], sizes = [16, 1], strides = [1, 1]} : vector<16x3xi32> to vector<16x1xi32>
    %20 = vector.extract_strided_slice %8 {offsets = [0, 1], sizes = [16, 1], strides = [1, 1]} : vector<16x3xf32> to vector<16x1xf32>
    %21 = vector.broadcast %19 : vector<16x1xi32> to vector<16x128xi32>
    %22 = arith.cmpi eq, %6, %21 : vector<16x128xi32>
    %cst_9 = arith.constant 0.000000e+00 : f32
    %23 = vector.shape_cast %20 : vector<16x1xf32> to vector<16x1xf32>
    %24 = vector.broadcast %23 : vector<16x1xf32> to vector<16x128xf32>
    %25 = vector.broadcast %cst_9 : f32 to vector<16x128xf32>
    %26 = arith.select %22, %24, %25 : vector<16x128xi1>, vector<16x128xf32>
    %27 = arith.addf %18, %26 : vector<16x128xf32>
    %28 = vector.extract_strided_slice %7 {offsets = [0, 2], sizes = [16, 1], strides = [1, 1]} : vector<16x3xi32> to vector<16x1xi32>
    %29 = vector.extract_strided_slice %8 {offsets = [0, 2], sizes = [16, 1], strides = [1, 1]} : vector<16x3xf32> to vector<16x1xf32>
    %30 = vector.broadcast %28 : vector<16x1xi32> to vector<16x128xi32>
    %31 = arith.cmpi eq, %6, %30 : vector<16x128xi32>
    %cst_10 = arith.constant 0.000000e+00 : f32
    %32 = vector.shape_cast %29 : vector<16x1xf32> to vector<16x1xf32>
    %33 = vector.broadcast %32 : vector<16x1xf32> to vector<16x128xf32>
    %34 = vector.broadcast %cst_10 : f32 to vector<16x128xf32>
    %35 = arith.select %31, %33, %34 : vector<16x128xi1>, vector<16x128xf32>
    %36 = arith.addf %27, %35 : vector<16x128xf32>
    %cst_11 = arith.constant 0.000000e+00 : f32
    %37 = vector.broadcast %cst_11 : f32 to vector<16x128xf32>
    %38 = arith.subf %37, %36 : vector<16x128xf32>
    %39 = arith.mulf %38, %2 : vector<16x128xf32>
    %cst_12 = arith.constant 0.000000e+00 : f32
    %40 = vector.broadcast %cst_12 : f32 to vector<16x128xf32>
    %41 = arith.maximumf %39, %40 : vector<16x128xf32>
    %42 = math.absf %39 : vector<16x128xf32>
    %cst_13 = arith.constant 0.000000e+00 : f32
    %43 = vector.broadcast %cst_13 : f32 to vector<16x128xf32>
    %44 = arith.subf %43, %42 : vector<16x128xf32>
    %45 = math.exp %44 : vector<16x128xf32>
    %46 = math.log1p %45 : vector<16x128xf32>
    %47 = arith.addf %41, %46 : vector<16x128xf32>
    %cst_14 = arith.constant 0.000000e+00 : f32
    %48 = vector.broadcast %cst_14 : f32 to vector<16x128xf32>
    %49 = arith.cmpf one, %36, %48 : vector<16x128xf32>
    %cst_15 = arith.constant 0.000000e+00 : f32
    %50 = vector.broadcast %cst_15 : f32 to vector<16x128xf32>
    %51 = arith.select %49, %47, %50 : vector<16x128xi1>, vector<16x128xf32>
    %52 = vector.shape_cast %51 : vector<16x128xf32> to vector<2x8x128xf32>
    %cst_16 = arith.constant dense<0.000000e+00> : vector<8x128xf32>
    %53 = vector.multi_reduction <add>, %52, %cst_16 [0] : vector<2x8x128xf32> to vector<8x128xf32>
    %c0_17 = arith.constant 0 : index
    %c0_18 = arith.constant 0 : index
    %54 = vector.load %arg6[%c0_17, %c0_18] : memref<8x128xf32, #tpu.memory_space<vmem>>, vector<8x128xf32>
    tpu.vector_store %arg6[%c0_17, %c0_18], %53 {strides = array<i32>} : memref<8x128xf32, #tpu.memory_space<vmem>>, vector<8x128xf32>,
    return
  }
  func.func @transform_0(%arg0: i32, %arg1: i32) -> (i32, i32) {
    %c0_i32 = arith.constant 0 : i32
    %c0_i32_0 = arith.constant 0 : i32
    return %arg0, %c0_i32 : i32, i32
  }
  func.func @transform_1(%arg0: i32, %arg1: i32) -> (i32, i32) {
    %c0_i32 = arith.constant 0 : i32
    %c0_i32_0 = arith.constant 0 : i32
    return %c0_i32, %arg1 : i32, i32
  }
  func.func @transform_2(%arg0: i32, %arg1: i32) -> (i32, i32) {
    %c0_i32 = arith.constant 0 : i32
    %c0_i32_0 = arith.constant 0 : i32
    return %arg0, %c0_i32 : i32, i32
  }
  func.func @transform_3(%arg0: i32, %arg1: i32) -> (i32, i32) {
    %c0_i32 = arith.constant 0 : i32
    %c0_i32_0 = arith.constant 0 : i32
    return %arg0, %c0_i32 : i32, i32
  }
  func.func @transform_4(%arg0: i32, %arg1: i32) -> (i32, i32) {
    %c0_i32 = arith.constant 0 : i32
    return %arg0, %arg1 : i32, i32
  }
}

</mosaic_0001>

<bundles_post_ra>
// kernel: tpu_custom_call.1
= control target key start
LH: loop header
LB: loop body
LE: loop exit
PB: predicated region body
PF: predicated region fallthrough
CT: control target
= control target key end

     0   :  { %9 = vsyncpa [#allocation3], 0  ;;  %s442_s0 = inlined_call_operand.vmem [shape: bf16[16,128], index: 0, kind: input, shape index: {}]   ;;  %s443_s1 = inlined_call_operand.hbm [shape: bf16[128,128], index: 1, kind: input, shape index: {}]   ;;  %s444_s2 = inlined_call_operand.vmem [shape: s32[16,3], index: 2, kind: input, shape index: {}]   ;;  %s445_s3 = inlined_call_operand.vmem [shape: f32[16,3], index: 3, kind: input, shape index: {}]   ;;  %s446_s4 = inlined_call_operand.hbm [shape: f32[8,128], index: 4, kind: output, shape index: {}]  }
   0x1   :  { %10 = vsyncpa [#allocation4], 0  ;;  %s387_s15 = smov [#allocation2]  }
   0x2   :  { %s18_s16 = sshll.u32 %s387_s15, 4  ;;  %s19_s16 = int_to_ptr.vmem [resolvable:$true] %s18_s16 }
   0x3   :  { %s351_s17 = scalar_lea.vmem %s19_s16, 1024  ;;  %p356_p1 = scmp.lt.s32.totalorder %s19_s16, %s19_s16 }
   0x4   :  { %p352_p0 = scmp.ne.s32.totalorder %s19_s16, %s351_s17  ;;  %p357_p2 = scmp.lt.s32.totalorder %s351_s17, %s351_s17 }
   0x6   :  { %p358_p3 = por %p357_p2, %p356_p1 }
   0x8   :  { %p359_p4 = pnand %p358_p3, %p352_p0 }
   0xa   :  { %362 = shalt.err (!%p359_p4)
}
   0xb   :  { %s388_s18 = smov 64   ;;  %s389_s19 = smov 4  }
   0xc   :  { %24 = dma.hbm_to_vmem [thread:$0]  %s443_s1, 1024, %s19_s16, [#allocation3], %s388_s18, %s388_s18, %s389_s19  }
   0xd   :  { %383 = dma.done.wait [#allocation3], 1024  }
   0xe   :  { %384 = vsyncadd [#allocation3], 4294966272  ;;  %v390_v0 = vmov 0.0   ;;  %vm391_vm0 = vmmov 0   ;;  %v392_v1 = vmov 1   ;;  %v393_v2 = vmov 0  }
   0xf   :  { %290 = vmatprep.subr.bf16.mxu0 %v390_v0  ;;  %306 = vmatprep.mubr.msk.bf16.mxu0 %vm391_vm0, %v390_v0  ;;  %v326_v3 = vld [vmem:[#allocation2 + $0x38] sm:$0xff]   ;;  %v327_v4 = vld [vmem:[#allocation2 + $0x30] sm:$0xff]   ;;  %v328_v5 = vld [vmem:[#allocation2 + $0x28] sm:$0xff]   ;;  %v394_v15 = vmov 2   ;;  %v147_v23 = vlaneseq }
  0x10   :  { %320 = vset.pattern.permute.xlu1 %v392_v1  ;;  %319 = vset.pattern.permute.xlu0 %v393_v2  ;;  %v151_v6 = vld [vmem:[%s444_s2] sm:$0xff]  ;;  %v152_v8 = vld [vmem:[%s444_s2 + $0x8] sm:$0xff]  ;;  %v330_v9 = vld [vmem:[#allocation2 + $0x18] sm:$0xff]  }
  0x11   :  { %291 = vmatpush3.bf16.msra.mxu0 %v326_v3  ;;  %v329_v7 = vld [vmem:[#allocation2 + $0x20] sm:$0xff]   ;;  %178 = vperm.xlu1 %320, %v151_v6   ;;  %v154_v10 = vld [vmem:[%s445_s3 + $0x8] sm:$0xff]  ;;  %v331_v12 = vld [vmem:[#allocation2 + $0x10] sm:$0xff]   ;;  %v148_v25 = vand.u32 127, %v147_v23 }
  0x12   :  { %292 = vmatprep.subr.bf16.mxu0 %v390_v0  ;;  %156 = vperm.xlu0 %319, %v151_v6   ;;  %v153_v11 = vld [vmem:[%s445_s3] sm:$0xff]  ;;  %v332_v13 = vld [vmem:[#allocation2 + $0x8] sm:$0xff]  }
  0x13   :  { %v333_v14 = vld [vmem:[#allocation2] sm:$0xff]  }
  0x14   :  { %v334_v16 = vld [vmem:[%s442_s0] sm:$0xff]   ;;  %s395_s0 = smov [#allocation5]  }
  0x15   :  { %293 = vmatpush3.bf16.msra.mxu0 %v327_v4  ;;  %181 = vperm.xlu1 %320, %v152_v8   ;;  %s263_s29 = sshll.u32 %s395_s0, 4  ;;  %s264_s29 = int_to_ptr.vmem [resolvable:$true] %s263_s29 }
  0x16   :  { %294 = vmatprep.subr.bf16.mxu0 %v390_v0  ;;  %159 = vperm.xlu0 %319, %v152_v8   ;;  %s363_s30 = scalar_lea.vmem %s264_s29, 128  ;;  %p368_p6 = scmp.lt.s32.totalorder %s264_s29, %s264_s29 }
  0x17   :  { %p364_p5 = scmp.ne.s32.totalorder %s264_s29, %s363_s30  ;;  %p369_p7 = scmp.lt.s32.totalorder %s363_s30, %s363_s30 }
  0x19   :  { %295 = vmatpush3.bf16.msra.mxu0 %v328_v5  ;;  %321 = vset.pattern.permute.xlu1 %v393_v2  ;;  %p370_p8 = por %p369_p7, %p368_p6 }
  0x1a   :  { %296 = vmatprep.subr.bf16.mxu0 %v390_v0  ;;  %170 = vperm.xlu1 %321, %v154_v10  }
  0x1b   :  { %165 = vperm.xlu0 %319, %v153_v11   ;;  %p371_p9 = pnand %p370_p8, %p364_p5 }
  0x1d   :  { %297 = vmatpush3.bf16.msra.mxu0 %v329_v7 }
  0x1e   :  { %298 = vmatprep.subr.bf16.mxu0 %v390_v0  ;;  %323 = vset.pattern.permute.xlu1 %v392_v1 }
  0x1f   :  { %190 = vperm.xlu1 %323, %v154_v10   ;;  %322 = vset.pattern.permute.xlu0 %v392_v1 }
  0x20   :  { %186 = vperm.xlu0 %322, %v153_v11  }
  0x21   :  { %299 = vmatpush3.bf16.msra.mxu0 %v330_v9 }
  0x22   :  { %300 = vmatprep.subr.bf16.mxu0 %v390_v0 }
  0x23   :  { %324 = vset.pattern.permute.xlu1 %v394_v15 }
  0x24   :  { %198 = vperm.xlu1 %324, %v151_v6   ;;  %325 = vset.pattern.permute.xlu0 %v394_v15 }
  0x25   :  { %301 = vmatpush3.bf16.msra.mxu0 %v331_v12  ;;  %201 = vperm.xlu0 %325, %v152_v8  }
  0x26   :  { %302 = vmatprep.subr.bf16.mxu0 %v390_v0 }
  0x28   :  { %206 = vperm.xlu1 %324, %v153_v11  }
  0x29   :  { %303 = vmatpush3.bf16.msra.mxu0 %v332_v13 }
  0x2a   :  { %304 = vmatprep.subr.bf16.mxu0 %v390_v0 }
  0x2c   :  { %210 = vperm.xlu1 %324, %v154_v10  }
  0x2d   :  { %305 = vmatpush3.bf16.msra.mxu0 %v333_v14 }
  0x30   :  { %307 = vmatmul.mubr.bf16.vlgmr.msra.gmra.mxu0 %v334_v16 }
  0x8c   :  { %v179_v17 = vpop.permute.xlu1 %178 }
  0x8d   :  { %v157_v19 = vpop.permute.xlu0 %156  ;;  %vm183_vm1 = vcmp.eq.s32.totalorder %v148_v25, %v179_v17 }
  0x8e   :  { %vm161_vm2 = vcmp.eq.s32.totalorder %v148_v25, %v157_v19 }
  0x90   :  { %v182_v18 = vpop.permute.xlu1 %181 }
  0x91   :  { %v160_v21 = vpop.permute.xlu0 %159  ;;  %vm184_vm3 = vcmp.eq.s32.totalorder %v148_v25, %v182_v18 }
  0x92   :  { %vm162_vm4 = vcmp.eq.s32.totalorder %v148_v25, %v160_v21 }
  0x95   :  { %v171_v20 = vpop.permute.xlu1 %170 }
  0x96   :  { %v166_v24 = vpop.permute.xlu0 %165  ;;  %v174_v33 = vsel %vm162_vm4, %v171_v20, 0.0 }
  0x97   :  { %v173_v29 = vsel %vm161_vm2, %v166_v24, 0.0 }
  0x9a   :  { %v191_v22 = vpop.permute.xlu1 %190 }
  0x9b   :  { %v187_v27 = vpop.permute.xlu0 %186  ;;  %v194_v34 = vsel %vm184_vm3, %v191_v22, 0.0 }
  0x9c   :  { %v193_v30 = vsel %vm183_vm1, %v187_v27, 0.0  ;;  %v196_v37 = vadd.f32 %v194_v34, %v174_v33 }
  0x9d   :  { %v195_v32 = vadd.f32 %v193_v30, %v173_v29 }
  0x9f   :  { %v199_v26 = vpop.permute.xlu1 %198 }
  0xa0   :  { %vm203_vm5 = vcmp.eq.s32.totalorder %v148_v25, %v199_v26  ;;  %v202_v31 = vpop.permute.xlu0 %201 }
  0xa1   :  { %vm204_vm6 = vcmp.eq.s32.totalorder %v148_v25, %v202_v31 }
  0xa3   :  { %v207_v28 = vpop.permute.xlu1 %206 }
  0xa4   :  { %v213_v35 = vsel %vm203_vm5, %v207_v28, 0.0 }
  0xa5   :  { %v215_v38 = vadd.f32 %v213_v35, %v195_v32 }
  0xa7   :  { %v211_v36 = vpop.permute.xlu1 %210  ;;  %v217_v41 = vsub.f32 0.0, %v215_v38  ;;  %vm251_vm9 = vcmp.ne.f32.partialorder %v215_v38, 0.0 }
  0xa8   :  { %v214_v39 = vsel %vm204_vm6, %v211_v36, 0.0 }
  0xa9   :  { %v216_v40 = vadd.f32 %v214_v39, %v196_v37 }
  0xab   :  { %v218_v46 = vsub.f32 0.0, %v216_v40  ;;  %vm252_vm10 = vcmp.ne.f32.partialorder %v216_v40, 0.0 }
  0xf0   :  { %v139_v42 = vpop.f32.mrf.mxu0 }
  0xf1   :  { %v219_v43 = vmul.f32 %v217_v41, %v139_v42 }
  0xf2   :  { %v308_v44 = vpop.f32.mrf.mxu0 }
  0xf3   :  { %v223_v45 = vand.u32 2147483647, %v219_v43  ;;  %v221_v6 = vmax.f32 %v219_v43, 0.0 }
  0xf4   :  { %v142_v47 = vpop.f32.mrf.mxu0 }
  0xf5   :  { %v225_v48 = vsub.f32 0.0, %v223_v45  ;;  %v220_v49 = vmul.f32 %v218_v46, %v142_v47 }
  0xf6   :  { %v309_v50 = vpop.f32.mrf.mxu0 }
  0xf7   :  { %v227_v51 = vmul.f32 1.442695, %v225_v48  ;;  %v224_v52 = vand.u32 2147483647, %v220_v49  ;;  %v222_v10 = vmax.f32 %v220_v49, 0.0 }
  0xf9   :  { %335 = vpow2.f32 %v227_v51  ;;  %v226_v53 = vsub.f32 0.0, %v224_v52 }
  0xfb   :  { %v229_v54 = vmul.f32 1.442695, %v226_v53 }
  0xfd   :  { %337 = vpow2.f32 %v229_v54 }
 0x106   :  { %v336_v55 = vpop.eup %335 }
 0x107   :  { %v231_v56 = vadd.f32 1.0, %v336_v55  ;;  %v234_v59 = vmul.f32 -0.5, %v336_v55  ;;  %v237_v62 = vand.u32 2147483647, %v336_v55 }
 0x109   :  { %339 = vlog2.f32 %v231_v56  ;;  %v235_v60 = vadd.f32 1.0, %v234_v59  ;;  %vm238_vm7 = vcmp.lt.f32.partialorder %v237_v62, 0.0004427343 }
 0x10a   :  { %v338_v57 = vpop.eup %337 }
 0x10b   :  { %v240_v58 = vadd.f32 1.0, %v338_v57  ;;  %v243_v61 = vmul.f32 -0.5, %v338_v57  ;;  %v236_v1 = vmul.f32 %v336_v55, %v235_v60  ;;  %v246_v3 = vand.u32 2147483647, %v338_v57 }
 0x10d   :  { %341 = vlog2.f32 %v240_v58  ;;  %v244_v2 = vadd.f32 1.0, %v243_v61  ;;  %vm247_vm8 = vcmp.lt.f32.partialorder %v246_v3, 0.0004427343 }
 0x10f   :  { %v245_v8 = vmul.f32 %v338_v57, %v244_v2 }
 0x116   :  { %v340_v63 = vpop.eup %339 }
 0x117   :  { %v233_v0 = vmul.f32 0.6931472, %v340_v63 }
 0x119   :  { %v239_v4 = vsel %vm238_vm7, %v236_v1, %v233_v0 }
 0x11a   :  { %v342_v5 = vpop.eup %341  ;;  %v249_v9 = vadd.f32 %v239_v4, %v221_v6 }
 0x11b   :  { %v242_v7 = vmul.f32 0.6931472, %v342_v5 }
 0x11c   :  { %v253_v13 = vsel %vm251_vm9, %v249_v9, 0.0 }
 0x11d   :  { %v248_v11 = vsel %vm247_vm8, %v245_v8, %v242_v7 }
 0x11e   :  { %v250_v12 = vadd.f32 %v248_v11, %v222_v10 }
 0x120   :  { %v254_v14 = vsel %vm252_vm10, %v250_v12, 0.0 }
 0x121   :  { %v255_v15 = vadd.f32 %v254_v14, %v253_v13 }
 0x123   :  { %256 = vst [vmem:[#allocation5] sm:$0xff] %v255_v15 }
 0x124   :  { %374 = shalt.err (!%p371_p9)
}
 0x125   :  { %266 = dma.vmem_to_hbm [thread:$0]  %s264_s29, 128, %s446_s4, [#allocation4]  }
 0x126   :  { %385 = dma.done.wait [#allocation4], 128  }
 0x127   :  { %386 = vsyncadd [#allocation4], 4294967168 }
 0x128   :  { %270 = vsyncpa [#allocation3], 1 }
 0x129   :  { %271 = vsyncpa [#allocation4], 1 }

</bundles_post_ra>
